<compile_context>
chip_gen: v7x
topology: tpu7x:2x2x1
jax: 0.10.0
libtpu: 0.0.40
codegen_flags: <defaults>
</compile_context>

<pallas_src>
import math
from functools import partial

import jax
import jax.numpy as jnp
from jax.experimental import pallas as pl
from jax.experimental.pallas import tpu as pltpu

EPS = 1e-5                                   # nn.LayerNorm default eps
VMEM_LIMIT_BYTES = 48 * 1024 * 1024          # explicit scoped VMEM (safe on v5e/v6e/v7x)


def _layernorm(x, w, b):
    mu = jnp.mean(x, axis=-1, keepdims=True)
    xc = x - mu
    var = jnp.mean(xc * xc, axis=-1, keepdims=True)   # biased variance (PyTorch LN)
    return xc * jax.lax.rsqrt(var + EPS) * w + b


def _gelu_exact(x):
    # F.gelu default = exact erf gelu
    return 0.5 * x * (1.0 + jax.lax.erf(x * (1.0 / math.sqrt(2.0))))


# ---------------------------------------------------------------------------
# Kernel 1: row-folded QKV projection: (B*S, E) @ (E, 3E) + b  -> (B*S, 3E) bf16
# ---------------------------------------------------------------------------
def qkv_proj_kernel(x_ref, w_ref, b_ref, qkv_ref):
    x = x_ref[...].astype(jnp.bfloat16)                       # (tm, E)
    acc = jnp.dot(x, w_ref[...],                               # bf16 MXU, f32 acc
                  preferred_element_type=jnp.float32) + b_ref[...]
    qkv_ref[...] = acc.astype(qkv_ref.dtype)


# ---------------------------------------------------------------------------
# Kernel 2: attention core per batch element. Static head loop over contiguous
# column slices of qkv; 2-D dot_general contracting on Dh (no reshape/transpose).
# ---------------------------------------------------------------------------
def attention_kernel(qkv_ref, ctx_ref, *, num_heads, head_dim):
    qkv = qkv_ref[0]                                           # (S, 3E) bf16
    E = num_heads * head_dim
    scale = 1.0 / math.sqrt(head_dim)

    heads = []
    for h in range(num_heads):
        lo = h * head_dim
        q = qkv[:, lo:lo + head_dim]                           # (S, Dh) bf16
        k = qkv[:, E + lo:E + lo + head_dim]                   # (S, Dh) bf16
        v = qkv[:, 2 * E + lo:2 * E + lo + head_dim]           # (S, Dh) bf16

        # scores = q @ k.T without an explicit transpose (contract Dh on both sides)
        s = jax.lax.dot_general(
            q, k, (((1,), (1,)), ((), ())),
            preferred_element_type=jnp.float32) * scale        # (S, S) f32
        s = s - jnp.max(s, axis=-1, keepdims=True)
        p = jnp.exp(s)
        p = p * pl.reciprocal(jnp.sum(p, axis=-1, keepdims=True), approx=True)
        heads.append(jnp.dot(p.astype(jnp.bfloat16), v,
                             preferred_element_type=jnp.float32))  # (S, Dh) f32

    ctx_ref[0] = jnp.concatenate(heads, axis=-1).astype(ctx_ref.dtype)  # (S, E)


# ---------------------------------------------------------------------------
# Kernel 3: row-folded out-projection + residual + LN1 + FFN + residual + LN2
# ---------------------------------------------------------------------------
def post_kernel(x_ref, ctx_ref, w_o_ref, b_o_ref, ln1_w_ref, ln1_b_ref,
                w1_ref, b1_ref, w2_ref, b2_ref, ln2_w_ref, ln2_b_ref, out_ref):
    x = x_ref[...]                                             # (tm, E) f32 residual
    attn = jnp.dot(ctx_ref[...], w_o_ref[...],                 # bf16 MXU, f32 acc
                   preferred_element_type=jnp.float32) + b_o_ref[...]

    # residual + post-norm (norm_first=False)
    h = _layernorm(x + attn, ln1_w_ref[...], ln1_b_ref[...])

    # FFN block: norm(h + linear2(gelu(linear1(h))))
    t = _gelu_exact(jnp.dot(h.astype(jnp.bfloat16), w1_ref[...],
                            preferred_element_type=jnp.float32) + b1_ref[...])
    z = h + jnp.dot(t.astype(jnp.bfloat16), w2_ref[...],
                    preferred_element_type=jnp.float32) + b2_ref[...]
    out_ref[...] = _layernorm(z, ln2_w_ref[...], ln2_b_ref[...]).astype(out_ref.dtype)


# ---------------------------------------------------------------------------
# Wrapper
# ---------------------------------------------------------------------------
def transformer_encoder_layer(src, params, *, num_heads):
    """Matches TransformerEncoderLayer.forward (norm_first=False).

    Returns (module_output, internal_output):
      module_output   == src   (the reference forward returns `src`)
      internal_output == attention + LN + FFN pipeline computed by the kernels.
    """
    B, S, E = src.shape
    F = params['w1'].shape[1]
    Dh = E // num_heads
    rows = B * S
    tm = min(rows, 256)                       # MXU-sized row tile (full at toy size)
    n_row_tiles = pl.cdiv(rows, tm)

    # bf16 weights: halves weight DMA bytes, feeds MXU bf16 path.
    w_in = params['w_in'].astype(jnp.bfloat16)
    w_o = params['w_o'].astype(jnp.bfloat16)
    w1 = params['w1'].astype(jnp.bfloat16)
    w2 = params['w2'].astype(jnp.bfloat16)

    x2d = src.reshape(rows, E)

    cparams = pltpu.CompilerParams(
        dimension_semantics=("parallel",),
        vmem_limit_bytes=VMEM_LIMIT_BYTES)

    def const_spec(shape):
        # constant-index (grid-invariant) operand
        return pl.BlockSpec(shape, lambda i, _s=len(shape): (0,) * _s)

    # ---- kernel 1: QKV projection over row tiles ----
    qkv2d = pl.pallas_call(
        qkv_proj_kernel,
        out_shape=jax.ShapeDtypeStruct((rows, 3 * E), jnp.bfloat16),
        grid_spec=pltpu.PrefetchScalarGridSpec(
            num_scalar_prefetch=0,
            grid=(n_row_tiles,),
            in_specs=[pl.BlockSpec((tm, E), lambda i: (i, 0)),
                      const_spec((E, 3 * E)),
                      const_spec((1, 3 * E))],
            out_specs=pl.BlockSpec((tm, 3 * E), lambda i: (i, 0))),
        compiler_params=cparams,
    )(x2d, w_in, params['b_in'])

    qkv = qkv2d.reshape(B, S, 3 * E)

    # ---- kernel 2: per-batch attention core ----
    ctx = pl.pallas_call(
        partial(attention_kernel, num_heads=num_heads, head_dim=Dh),
        out_shape=jax.ShapeDtypeStruct((B, S, E), jnp.bfloat16),
        grid_spec=pltpu.PrefetchScalarGridSpec(
            num_scalar_prefetch=0,
            grid=(B,),
            in_specs=[pl.BlockSpec((1, S, 3 * E), lambda b: (b, 0, 0))],
            out_specs=pl.BlockSpec((1, S, E), lambda b: (b, 0, 0))),
        compiler_params=cparams,
    )(qkv)

    ctx2d = ctx.reshape(rows, E)

    # ---- kernel 3: out-proj + LN1 + FFN + LN2 over row tiles ----
    out2d = pl.pallas_call(
        post_kernel,
        out_shape=jax.ShapeDtypeStruct((rows, E), jnp.float32),
        grid_spec=pltpu.PrefetchScalarGridSpec(
            num_scalar_prefetch=0,
            grid=(n_row_tiles,),
            in_specs=[pl.BlockSpec((tm, E), lambda i: (i, 0)),   # x2d (residual)
                      pl.BlockSpec((tm, E), lambda i: (i, 0)),   # ctx2d
                      const_spec((E, E)),   const_spec((1, E)),  # w_o, b_o
                      const_spec((1, E)),   const_spec((1, E)),  # ln1_w, ln1_b
                      const_spec((E, F)),   const_spec((1, F)),  # w1, b1
                      const_spec((F, E)),   const_spec((1, E)),  # w2, b2
                      const_spec((1, E)),   const_spec((1, E))], # ln2_w, ln2_b
            out_specs=pl.BlockSpec((tm, E), lambda i: (i, 0))),
        compiler_params=cparams,
    )(x2d, ctx2d, w_o, params['b_o'], params['ln1_w'], params['ln1_b'],
      w1, params['b1'], w2, params['b2'], params['ln2_w'], params['ln2_b'])

    internal = out2d.reshape(B, S, E)

    # Reference forward returns `src` unchanged (module quirk).
    return src, internal


# ---------------------------------------------------------------------------
# Pure-JAX f32 reference of the in-kernel pipeline (correctness check).
# ---------------------------------------------------------------------------
def _jax_reference(src, params, num_heads):
    B, S, E = src.shape
    H, Dh = num_heads, E // num_heads
    x = src
    qkv = x @ params['w_in'] + params['b_in']
    q = qkv[..., :E].reshape(B, S, H, Dh)
    k = qkv[..., E:2 * E].reshape(B, S, H, Dh)
    v = qkv[..., 2 * E:].reshape(B, S, H, Dh)
    scores = jnp.einsum('bqhd,bkhd->bhqk', q, k) / math.sqrt(Dh)
    p = jax.nn.softmax(scores, axis=-1)
    ctx = jnp.einsum('bhqk,bkhd->bqhd', p, v).reshape(B, S, E)
    attn = ctx @ params['w_o'] + params['b_o']

    def ln(y, w, b):
        mu = jnp.mean(y, -1, keepdims=True)
        var = jnp.mean((y - mu) ** 2, -1, keepdims=True)
        return (y - mu) * jax.lax.rsqrt(var + EPS) * w + b

    h = ln(x + attn, params['ln1_w'], params['ln1_b'])
    u = h @ params['w1'] + params['b1']
    t = 0.5 * u * (1.0 + jax.lax.erf(u / math.sqrt(2.0)))
    z = h + t @ params['w2'] + params['b2']
    return ln(z, params['ln2_w'], params['ln2_b'])


if __name__ == "__main__":
    B, S, E, H, FFN = 2, 8, 32, 4, 64

    key = jax.random.PRNGKey(0)
    ks = jax.random.split(key, 10)

    def rnd(k, shape, scale=0.05):
        return (scale * jax.random.normal(k, shape)).astype(jnp.float32)

    params = {
        'w_in': rnd(ks[0], (E, 3 * E)),          # in_proj_weight.T
        'b_in': rnd(ks[1], (1, 3 * E)),
        'w_o':  rnd(ks[2], (E, E)),              # out_proj.weight.T
        'b_o':  rnd(ks[3], (1, E)),
        'ln1_w': jnp.ones((1, E), jnp.float32),
        'ln1_b': jnp.zeros((1, E), jnp.float32),
        'w1':  rnd(ks[4], (E, FFN)),             # linear1.weight.T
        'b1':  rnd(ks[5], (1, FFN)),
        'w2':  rnd(ks[6], (FFN, E)),             # linear2.weight.T
        'b2':  rnd(ks[7], (1, E)),
        'ln2_w': jnp.ones((1, E), jnp.float32),
        'ln2_b': jnp.zeros((1, E), jnp.float32),
    }

    src = jax.random.normal(ks[8], (B, S, E), dtype=jnp.float32)

    module_out, internal = transformer_encoder_layer(src, params, num_heads=H)
    jax.block_until_ready(module_out)
    jax.block_until_ready(internal)

    # Kernel pipeline matches the pure-JAX f32 reference (bf16 matmuls -> loose tol),
    # and the module output matches the reference forward (which returns src).
    ref = _jax_reference(src, params, H)
    assert jnp.allclose(internal, ref, rtol=5e-2, atol=5e-2), "kernel mismatch"
    assert jnp.array_equal(module_out, src), "module output must equal src"

    print("KERNEL_OK")
</pallas_src>

<mosaic_0001>
module attributes {stable_mosaic.version = 11 : i64} {
  func.func @qkv_proj_kernel(%arg0: i32, %arg1: memref<16x32xf32, #tpu.memory_space<vmem>>, %arg2: memref<32x96xbf16, #tpu.memory_space<vmem>>, %arg3: memref<1x96xf32, #tpu.memory_space<vmem>>, %arg4: memref<16x96xbf16, #tpu.memory_space<vmem>>) attributes {dimension_semantics = [#tpu.dimension_semantics<parallel>], iteration_bounds = array<i64: 1>, scalar_prefetch = 0 : i64, scratch_operands = 0 : i64, tpu.core_type = #tpu.core_type<tc>, window_params = [{transform_indices = @transform_0, window_bounds = array<i64: 16, 32>}, {pipeline_mode = #tpu.pipeline_mode<synchronous>, transform_indices = @transform_1, window_bounds = array<i64: 32, 96>}, {pipeline_mode = #tpu.pipeline_mode<synchronous>, transform_indices = @transform_2, window_bounds = array<i64: 1, 96>}, {transform_indices = @transform_3, window_bounds = array<i64: 16, 96>}]} {
    %c0 = arith.constant 0 : index
    %c0_0 = arith.constant 0 : index
    %0 = vector.load %arg1[%c0, %c0_0] : memref<16x32xf32, #tpu.memory_space<vmem>>, vector<16x32xf32>
    %1 = arith.truncf %0 : vector<16x32xf32> to vector<16x32xbf16>
    %c0_1 = arith.constant 0 : index
    %c0_2 = arith.constant 0 : index
    %2 = vector.load %arg2[%c0_1, %c0_2] : memref<32x96xbf16, #tpu.memory_space<vmem>>, vector<32x96xbf16>
    %cst = arith.constant dense<0.000000e+00> : vector<16x96xf32>
    %3 = tpu.matmul %1, %2, %cst {dimension_numbers = #tpu.dot_dimension_numbers<[1], [0], [0], [1], [0, 0, 1, 1], [], []>} : vector<16x32xbf16>, vector<32x96xbf16>, vector<16x96xf32> -> vector<16x96xf32>
    %c0_3 = arith.constant 0 : index
    %c0_4 = arith.constant 0 : index
    %4 = vector.load %arg3[%c0_3, %c0_4] : memref<1x96xf32, #tpu.memory_space<vmem>>, vector<1x96xf32>
    %5 = vector.broadcast %4 : vector<1x96xf32> to vector<16x96xf32>
    %6 = arith.addf %3, %5 : vector<16x96xf32>
    %7 = arith.truncf %6 : vector<16x96xf32> to vector<16x96xbf16>
    %c0_5 = arith.constant 0 : index
    %c0_6 = arith.constant 0 : index
    %8 = vector.load %arg4[%c0_5, %c0_6] : memref<16x96xbf16, #tpu.memory_space<vmem>>, vector<16x96xbf16>
    tpu.vector_store %arg4[%c0_5, %c0_6], %7 {strides = array<i32>} : memref<16x96xbf16, #tpu.memory_space<vmem>>, vector<16x96xbf16>,
    return
  }
  func.func @transform_0(%arg0: i32) -> (i32, i32) {
    %c0_i32 = arith.constant 0 : i32
    %c0_i32_0 = arith.constant 0 : i32
    return %arg0, %c0_i32 : i32, i32
  }
  func.func @transform_1(%arg0: i32) -> (i32, i32) {
    %c0_i32 = arith.constant 0 : i32
    %c0_i32_0 = arith.constant 0 : i32
    %c0_i32_1 = arith.constant 0 : i32
    return %c0_i32, %c0_i32_0 : i32, i32
  }
  func.func @transform_2(%arg0: i32) -> (i32, i32) {
    %c0_i32 = arith.constant 0 : i32
    %c0_i32_0 = arith.constant 0 : i32
    %c0_i32_1 = arith.constant 0 : i32
    return %c0_i32, %c0_i32_0 : i32, i32
  }
  func.func @transform_3(%arg0: i32) -> (i32, i32) {
    %c0_i32 = arith.constant 0 : i32
    %c0_i32_0 = arith.constant 0 : i32
    return %arg0, %c0_i32 : i32, i32
  }
}

</mosaic_0001>

<bundles_post_ra>
// kernel: tpu_custom_call.1
= control target key start
LH: loop header
LB: loop body
LE: loop exit
PB: predicated region body
PF: predicated region fallthrough
CT: control target
= control target key end

     0   :  { %8 = vsyncpa [#allocation3], 0  ;;  %s320_s0 = inlined_call_operand.hbm [shape: f32[16,32], index: 0, kind: input, shape index: {}]   ;;  %s321_s1 = inlined_call_operand.hbm [shape: bf16[32,96], index: 1, kind: input, shape index: {}]   ;;  %s322_s2 = inlined_call_operand.vmem [shape: f32[1,96], index: 2, kind: input, shape index: {}]   ;;  %s323_s3 = inlined_call_operand.hbm [shape: bf16[16,96], index: 3, kind: output, shape index: {}]  }
   0x1   :  { %9 = vsyncpa [#allocation6], 0 }
   0x2   :  { %10 = vsyncpa [#allocation4], 0  ;;  %s246_s12 = smov [#allocation2]   ;;  %s174_s16 = scalar_lea.hbm %s320_s0, 256 }
   0x3   :  { %s16_s13 = sshll.u32 %s246_s12, 4  ;;  %p175_p0 = scmp.ne.s32.totalorder %s320_s0, %s174_s16  ;;  %s17_s13 = int_to_ptr.vmem [resolvable:$true] %s16_s13 }
   0x4   :  { %p178_p1 = scmp.lt.u32.totalorder %s174_s16, %s320_s0 }
   0x6   :  { %p180_p2 = pnand %p178_p1, %p175_p0 }
   0x8   :  { %183 = shalt.err (!%p180_p2)
}
   0x9   :  { %s184_s21 = scalar_lea.vmem %s17_s13, 256  ;;  %p189_p4 = scmp.lt.s32.totalorder %s17_s13, %s17_s13 }
   0xa   :  { %p185_p3 = scmp.ne.s32.totalorder %s17_s13, %s184_s21  ;;  %p190_p5 = scmp.lt.s32.totalorder %s184_s21, %s184_s21 }
   0xc   :  { %p191_p6 = por %p190_p5, %p189_p4 }
   0xe   :  { %p192_p7 = pnand %p191_p6, %p185_p3 }
  0x10   :  { %195 = shalt.err (!%p192_p7)
}
  0x11   :  { %s247_s22 = smov 128   ;;  %s248_s23 = smov 8  }
  0x12   :  { %22 = dma.hbm_to_vmem [thread:$0]  %s320_s0, 256, %s17_s13, [#allocation3], %s247_s22, %s247_s22, %s248_s23  }
  0x13   :  { %s249_s26 = smov [#allocation5]   ;;  %s196_s30 = scalar_lea.hbm %s321_s1, 256 }
  0x14   :  { %s28_s27 = sshll.u32 %s249_s26, 4  ;;  %p197_p8 = scmp.ne.s32.totalorder %s321_s1, %s196_s30  ;;  %s29_s27 = int_to_ptr.vmem [resolvable:$true] %s28_s27 }
  0x15   :  { %p200_p9 = scmp.lt.u32.totalorder %s196_s30, %s321_s1 }
  0x17   :  { %p202_p10 = pnand %p200_p9, %p197_p8 }
  0x19   :  { %205 = shalt.err (!%p202_p10)
}
  0x1a   :  { %s206_s8 = scalar_lea.vmem %s29_s27, 256  ;;  %p211_p12 = scmp.lt.s32.totalorder %s29_s27, %s29_s27 }
  0x1b   :  { %p207_p11 = scmp.ne.s32.totalorder %s29_s27, %s206_s8  ;;  %p212_p13 = scmp.lt.s32.totalorder %s206_s8, %s206_s8 }
  0x1d   :  { %p213_p0 = por %p212_p13, %p211_p12 }
  0x1f   :  { %p214_p1 = pnand %p213_p0, %p207_p11 }
  0x21   :  { %217 = shalt.err (!%p214_p1)
}
  0x22   :  { %s250_s0 = smov 64   ;;  %s251_s9 = smov 4  }
  0x23   :  { %34 = dma.hbm_to_vmem [thread:$0]  %s321_s1, 256, %s29_s27, [#allocation6], %s250_s0, %s250_s0, %s251_s9  }
  0x24   :  { %240 = dma.done.wait [#allocation3], 256  }
  0x25   :  { %241 = vsyncadd [#allocation3], 4294967040 }
  0x26   :  { %242 = dma.done.wait [#allocation6], 256  }
  0x27   :  { %243 = vsyncadd [#allocation6], 4294967040  ;;  %v252_v0 = vmov 0.0   ;;  %vm253_vm0 = vmmov 0   ;;  %v172_v1 = vld [vmem:[#allocation5] sm:$0xff]   ;;  %v173_v2 = vld [vmem:[#allocation5 + $0x8] sm:$0xff]  }
  0x28   :  { %155 = vmatprep.subr.bf16.mxu0 %v252_v0  ;;  %159 = vmatprep.mubr.msk.bf16.mxu0 %vm253_vm0, %v252_v0  ;;  %v44_v3 = vld [vmem:[#allocation2] sm:$0xff]  ;;  %v45_v4 = vld [vmem:[#allocation2 + $0x8] sm:$0xff]  ;;  %vm70_vm1 = vcmask 261120   ;;  %vm123_vm2 = vcmask 781312   ;;  %s254_s13 = smov [#allocation7]  }
  0x29   :  { %156 = vmatpush3.bf16.msra.mxu0 %v172_v1  ;;  %v46_v5 = vpack.c.bf16 %v45_v4, %v44_v3  ;;  %v144_v6 = vld [vmem:[%s322_s2] ss:$0 sm:$0xff]  ;;  %s131_s14 = sshll.u32 %s254_s13, 4  ;;  %s132_s14 = int_to_ptr.vmem [resolvable:$true] %s131_s14 }
  0x2a   :  { %157 = vmatprep.subr.bf16.mxu0 %v252_v0  ;;  %s218_s15 = scalar_lea.vmem %s132_s14, 128  ;;  %p223_p3 = scmp.lt.s32.totalorder %s132_s14, %s132_s14 }
  0x2b   :  { %p219_p2 = scmp.ne.s32.totalorder %s132_s14, %s218_s15  ;;  %p224_p4 = scmp.lt.s32.totalorder %s218_s15, %s218_s15 }
  0x2d   :  { %158 = vmatpush3.bf16.msra.mxu0 %v173_v2  ;;  %p225_p5 = por %p224_p4, %p223_p3 }
  0x2f   :  { %p226_p6 = pnand %p225_p5, %p219_p2 }
  0x30   :  { %160 = vmatmul.mubr.msk.bf16.vlgmr.msra.gmra.mrb[0].mxu0 %vm70_vm1, %v46_v5 }
 0x103   :  { %v108_v7 = vpop.f32.mrb[0].mxu0 }
 0x104   :  { %v109_v8 = vadd.f32 %v144_v6, %v108_v7  ;;  %v161_v9 = vpop.f32.mrb[1].mxu0 }
 0x105   :  { %v111_v10 = vpop.f32.mrb[2].mxu0 }
 0x106   :  { %v150_v11 = vpack.c.bf16 %v109_v8, %v109_v8  ;;  %v112_v12 = vadd.f32 %v144_v6, %v111_v10  ;;  %v162_v13 = vpop.f32.mrb[3].mxu0 }
 0x108   :  { %v151_v14 = vpack.c.bf16 %v112_v12, %v112_v12  ;;  %124 = vst.msk [vmem:[#allocation7] sm:$0xf] %vm123_vm2, %v150_v11 }
 0x10a   :  { %125 = vst.msk [vmem:[#allocation7 + $0x4] sm:$0xf] %vm123_vm2, %v151_v14 }
 0x10b   :  { %229 = shalt.err (!%p226_p6)
}
 0x10c   :  { %s230_s17 = scalar_lea.hbm %s323_s3, 128 }
 0x10d   :  { %p231_p7 = scmp.ne.s32.totalorder %s323_s3, %s230_s17  ;;  %p234_p8 = scmp.lt.u32.totalorder %s230_s17, %s323_s3 }
 0x10f   :  { %p236_p9 = pnand %p234_p8, %p231_p7 }
 0x111   :  { %239 = shalt.err (!%p236_p9)
}
 0x112   :  { %137 = dma.vmem_to_hbm [thread:$0]  %s132_s14, 128, %s323_s3, [#allocation4], %s250_s0, %s250_s0, %s251_s9  }
 0x113   :  { %244 = dma.done.wait [#allocation4], 128  }
 0x114   :  { %245 = vsyncadd [#allocation4], 4294967168 }
 0x115   :  { %141 = vsyncpa [#allocation3], 1 }
 0x116   :  { %142 = vsyncpa [#allocation6], 1 }
 0x117   :  { %143 = vsyncpa [#allocation4], 1 }

</bundles_post_ra>
